<compile_context>
chip_gen: v7x
topology: tpu7x:2x2x1
jax: 0.10.0
libtpu: 0.0.40
codegen_flags: <defaults>
</compile_context>

<pallas_src>
import functools

import jax
import jax.numpy as jnp
from jax import lax
from jax.experimental import pallas as pl
from jax.experimental.pallas import tpu as pltpu


def _distill_loss_kernel(zs_ref, w_ref, b_ref, zt_ref, cdiff_ref, *, matmul_dtype):
    n = zs_ref.shape[0]
    inv_n = jnp.float32(1.0 / n)

    # --- embed: f_s = z_s @ W^T + b  (MXU, contract on last dim of both, f32 acc) ---
    zs = zs_ref[...].astype(matmul_dtype)
    w = w_ref[...].astype(matmul_dtype)          # (tn, s_dim), untransposed
    f_s = lax.dot_general(zs, w, (((1,), (1,)), ((), ())),
                          preferred_element_type=jnp.float32)
    f_s = f_s + b_ref[...]                       # (n, tn)
    f_t = zt_ref[...].astype(jnp.float32)        # (n, tn)

    # --- BatchNorm1d moments (training mode, eps=0, affine=False, biased var) ---
    mean_s = jnp.sum(f_s, axis=0, keepdims=True) * inv_n
    xc_s = f_s - mean_s
    var_s = jnp.sum(xc_s * xc_s, axis=0, keepdims=True) * inv_n

    mean_t = jnp.sum(f_t, axis=0, keepdims=True) * inv_n
    xc_t = f_t - mean_t
    var_t = jnp.sum(xc_t * xc_t, axis=0, keepdims=True) * inv_n

    # --- cross-correlation with rsqrt scalings factored out of the batch sum ---
    # c_st = (sum_b xc_s * xc_t / n) * rsqrt(var_s) * rsqrt(var_t)
    cross = jnp.sum(xc_s * xc_t, axis=0, keepdims=True) * inv_n
    c_st = cross * lax.rsqrt(var_s) * lax.rsqrt(var_t)     # (1, tn)

    d = c_st - jnp.float32(1.0)
    d2 = d * d
    cdiff_ref[...] = d2 * d2                     # |c - 1|^4, lane-dense (1, tn)


def _pick_tile(t_dim):
    if t_dim <= 512:
        return t_dim
    for cand in (512, 384, 256, 128):
        if t_dim % cand == 0:
            return cand
    return t_dim  # fall back to a single full-width tile


@functools.partial(jax.jit, static_argnames=("tn", "matmul_dtype"))
def distillation_loss(z_s, z_t, w, b, *, tn=None, matmul_dtype=jnp.float32):
    n, s_dim = z_s.shape
    _, t_dim = z_t.shape
    if tn is None:
        tn = _pick_tile(t_dim)
    assert t_dim % tn == 0
    b2 = b.reshape(1, t_dim)

    itemsize = 4  # inputs are f32 at the pallas_call boundary
    # Double-buffered input/output tiles + in-kernel f32 temporaries.
    # TODO(synk): for very large batches on v7x (64 MiB VMEM), move z_s to
    # memory_space=pl.ANY and DMA it once into a single VMEM scratch instead of
    # letting BlockSpec double-buffer the grid-invariant block.
    est = itemsize * (2 * n * s_dim        # z_s (grid-invariant, still 2 bufs)
                      + 2 * tn * s_dim     # W tile
                      + 2 * n * tn         # z_t tile
                      + 4 * tn             # bias + output tiles
                      + 6 * n * tn)        # f_s, f_t, centered copies, products
    vmem_limit = int(min(max(est * 1.25, 32 * 1024 * 1024), 64 * 1024 * 1024))

    kernel = functools.partial(_distill_loss_kernel, matmul_dtype=matmul_dtype)

    c_diff = pl.pallas_call(
        kernel,
        out_shape=jax.ShapeDtypeStruct((1, t_dim), jnp.float32),
        grid_spec=pltpu.PrefetchScalarGridSpec(
            num_scalar_prefetch=0,
            grid=(t_dim // tn,),
            in_specs=[
                pl.BlockSpec((n, s_dim), lambda j: (0, 0)),   # z_s (full, invariant)
                pl.BlockSpec((tn, s_dim), lambda j: (j, 0)),  # W tile (untransposed)
                pl.BlockSpec((1, tn), lambda j: (0, j)),      # bias tile
                pl.BlockSpec((n, tn), lambda j: (0, j)),      # z_t tile
            ],
            out_specs=pl.BlockSpec((1, tn), lambda j: (0, j)),  # per-feature |c-1|^4
        ),
        compiler_params=pltpu.CompilerParams(
            dimension_semantics=("parallel",),
            vmem_limit_bytes=vmem_limit,
        ),
    )(z_s, w, b2, z_t)

    # Tiny epilogue in plain JAX: sum over all features + log.
    return jnp.log(jnp.sum(c_diff) + jnp.float32(1e-5))


def reference_loss(z_s, z_t, w, b):
    f_s = z_s @ w.T + b
    n = z_s.shape[0]

    def bn(x):
        m = x.mean(axis=0)
        v = ((x - m) ** 2).mean(axis=0)   # biased var, eps = 0
        return (x - m) / jnp.sqrt(v)

    fs_n = bn(f_s)
    ft_n = bn(z_t)
    c_st = jnp.sum(fs_n * ft_n, axis=0) / n
    c_diff = jnp.abs(c_st - 1.0) ** 4.0
    return jnp.log(jnp.sum(c_diff) + 1e-5)


if __name__ == "__main__":
    # Small, TPU-tile-friendly shapes: batch=8, s_dim=128, t_dim=256.
    n, s_dim, t_dim = 8, 128, 256
    alpha = 1.0  # unused in forward(); kept for parity with the module signature

    key = jax.random.PRNGKey(0)
    k1, k2, k3, k4 = jax.random.split(key, 4)

    z_s = jax.random.normal(k1, (n, s_dim), dtype=jnp.float32)
    z_t = jax.random.normal(k2, (n, t_dim), dtype=jnp.float32)

    # Deterministic init for nn.Linear(s_dim, t_dim): uniform(-1/sqrt(s_dim), 1/sqrt(s_dim))
    bound = 1.0 / (s_dim ** 0.5)
    w = jax.random.uniform(k3, (t_dim, s_dim), jnp.float32, -bound, bound)
    b = jax.random.uniform(k4, (t_dim,), jnp.float32, -bound, bound)

    loss = distillation_loss(z_s, z_t, w, b)
    loss = jax.block_until_ready(loss)

    ref = reference_loss(z_s, z_t, w, b)
    assert jnp.allclose(loss, ref, rtol=1e-4, atol=1e-4), (loss, ref)

    print("KERNEL_OK")
</pallas_src>

<mosaic_0001>
module attributes {stable_mosaic.version = 11 : i64} {
  func.func @_distill_loss_kernel(%arg0: i32, %arg1: memref<8x128xf32, #tpu.memory_space<vmem>>, %arg2: memref<256x128xf32, #tpu.memory_space<vmem>>, %arg3: memref<1x256xf32, #tpu.memory_space<vmem>>, %arg4: memref<8x256xf32, #tpu.memory_space<vmem>>, %arg5: memref<1x256xf32, #tpu.memory_space<vmem>>) attributes {dimension_semantics = [#tpu.dimension_semantics<parallel>], iteration_bounds = array<i64: 1>, scalar_prefetch = 0 : i64, scratch_operands = 0 : i64, tpu.core_type = #tpu.core_type<tc>, window_params = [{pipeline_mode = #tpu.pipeline_mode<synchronous>, transform_indices = @transform_0, window_bounds = array<i64: 8, 128>}, {transform_indices = @transform_1, window_bounds = array<i64: 256, 128>}, {transform_indices = @transform_2, window_bounds = array<i64: 1, 256>}, {transform_indices = @transform_3, window_bounds = array<i64: 8, 256>}, {transform_indices = @transform_4, window_bounds = array<i64: 1, 256>}]} {
    %c0 = arith.constant 0 : index
    %c0_0 = arith.constant 0 : index
    %0 = vector.load %arg1[%c0, %c0_0] : memref<8x128xf32, #tpu.memory_space<vmem>>, vector<8x128xf32>
    %c0_1 = arith.constant 0 : index
    %c0_2 = arith.constant 0 : index
    %1 = vector.load %arg2[%c0_1, %c0_2] : memref<256x128xf32, #tpu.memory_space<vmem>>, vector<256x128xf32>
    %cst = arith.constant dense<0.000000e+00> : vector<8x256xf32>
    %2 = tpu.matmul %0, %1, %cst {dimension_numbers = #tpu.dot_dimension_numbers<[1], [1], [0], [0], [0, 0, 1, 0], [], []>} : vector<8x128xf32>, vector<256x128xf32>, vector<8x256xf32> -> vector<8x256xf32>
    %c0_3 = arith.constant 0 : index
    %c0_4 = arith.constant 0 : index
    %3 = vector.load %arg3[%c0_3, %c0_4] : memref<1x256xf32, #tpu.memory_space<vmem>>, vector<1x256xf32>
    %4 = vector.broadcast %3 : vector<1x256xf32> to vector<8x256xf32>
    %5 = arith.addf %2, %4 : vector<8x256xf32>
    %c0_5 = arith.constant 0 : index
    %c0_6 = arith.constant 0 : index
    %6 = vector.load %arg4[%c0_5, %c0_6] : memref<8x256xf32, #tpu.memory_space<vmem>>, vector<8x256xf32>
    %cst_7 = arith.constant dense<0.000000e+00> : vector<256xf32>
    %7 = vector.multi_reduction <add>, %5, %cst_7 [0] : vector<8x256xf32> to vector<256xf32>
    %8 = vector.shape_cast %7 : vector<256xf32> to vector<1x256xf32>
    %cst_8 = arith.constant 1.250000e-01 : f32
    %9 = vector.broadcast %cst_8 : f32 to vector<1x256xf32>
    %10 = arith.mulf %8, %9 : vector<1x256xf32>
    %11 = vector.broadcast %10 : vector<1x256xf32> to vector<8x256xf32>
    %12 = arith.subf %5, %11 : vector<8x256xf32>
    %13 = arith.mulf %12, %12 : vector<8x256xf32>
    %cst_9 = arith.constant dense<0.000000e+00> : vector<256xf32>
    %14 = vector.multi_reduction <add>, %13, %cst_9 [0] : vector<8x256xf32> to vector<256xf32>
    %15 = vector.shape_cast %14 : vector<256xf32> to vector<1x256xf32>
    %cst_10 = arith.constant 1.250000e-01 : f32
    %16 = vector.broadcast %cst_10 : f32 to vector<1x256xf32>
    %17 = arith.mulf %15, %16 : vector<1x256xf32>
    %cst_11 = arith.constant dense<0.000000e+00> : vector<256xf32>
    %18 = vector.multi_reduction <add>, %6, %cst_11 [0] : vector<8x256xf32> to vector<256xf32>
    %19 = vector.shape_cast %18 : vector<256xf32> to vector<1x256xf32>
    %cst_12 = arith.constant 1.250000e-01 : f32
    %20 = vector.broadcast %cst_12 : f32 to vector<1x256xf32>
    %21 = arith.mulf %19, %20 : vector<1x256xf32>
    %22 = vector.broadcast %21 : vector<1x256xf32> to vector<8x256xf32>
    %23 = arith.subf %6, %22 : vector<8x256xf32>
    %24 = arith.mulf %23, %23 : vector<8x256xf32>
    %cst_13 = arith.constant dense<0.000000e+00> : vector<256xf32>
    %25 = vector.multi_reduction <add>, %24, %cst_13 [0] : vector<8x256xf32> to vector<256xf32>
    %26 = vector.shape_cast %25 : vector<256xf32> to vector<1x256xf32>
    %cst_14 = arith.constant 1.250000e-01 : f32
    %27 = vector.broadcast %cst_14 : f32 to vector<1x256xf32>
    %28 = arith.mulf %26, %27 : vector<1x256xf32>
    %29 = arith.mulf %12, %23 : vector<8x256xf32>
    %cst_15 = arith.constant dense<0.000000e+00> : vector<256xf32>
    %30 = vector.multi_reduction <add>, %29, %cst_15 [0] : vector<8x256xf32> to vector<256xf32>
    %31 = vector.shape_cast %30 : vector<256xf32> to vector<1x256xf32>
    %cst_16 = arith.constant 1.250000e-01 : f32
    %32 = vector.broadcast %cst_16 : f32 to vector<1x256xf32>
    %33 = arith.mulf %31, %32 : vector<1x256xf32>
    %34 = math.rsqrt %17 : vector<1x256xf32>
    %35 = arith.mulf %33, %34 : vector<1x256xf32>
    %36 = math.rsqrt %28 : vector<1x256xf32>
    %37 = arith.mulf %35, %36 : vector<1x256xf32>
    %cst_17 = arith.constant 1.000000e+00 : f32
    %38 = vector.broadcast %cst_17 : f32 to vector<1x256xf32>
    %39 = arith.subf %37, %38 : vector<1x256xf32>
    %40 = arith.mulf %39, %39 : vector<1x256xf32>
    %41 = arith.mulf %40, %40 : vector<1x256xf32>
    %c0_18 = arith.constant 0 : index
    %c0_19 = arith.constant 0 : index
    %42 = vector.load %arg5[%c0_18, %c0_19] : memref<1x256xf32, #tpu.memory_space<vmem>>, vector<1x256xf32>
    tpu.vector_store %arg5[%c0_18, %c0_19], %41 {strides = array<i32>} : memref<1x256xf32, #tpu.memory_space<vmem>>, vector<1x256xf32>,
    return
  }
  func.func @transform_0(%arg0: i32) -> (i32, i32) {
    %c0_i32 = arith.constant 0 : i32
    %c0_i32_0 = arith.constant 0 : i32
    %c0_i32_1 = arith.constant 0 : i32
    return %c0_i32, %c0_i32_0 : i32, i32
  }
  func.func @transform_1(%arg0: i32) -> (i32, i32) {
    %c0_i32 = arith.constant 0 : i32
    %c0_i32_0 = arith.constant 0 : i32
    return %arg0, %c0_i32 : i32, i32
  }
  func.func @transform_2(%arg0: i32) -> (i32, i32) {
    %c0_i32 = arith.constant 0 : i32
    %c0_i32_0 = arith.constant 0 : i32
    return %c0_i32, %arg0 : i32, i32
  }
  func.func @transform_3(%arg0: i32) -> (i32, i32) {
    %c0_i32 = arith.constant 0 : i32
    %c0_i32_0 = arith.constant 0 : i32
    return %c0_i32, %arg0 : i32, i32
  }
  func.func @transform_4(%arg0: i32) -> (i32, i32) {
    %c0_i32 = arith.constant 0 : i32
    %c0_i32_0 = arith.constant 0 : i32
    return %c0_i32, %arg0 : i32, i32
  }
}

</mosaic_0001>

<bundles_post_ra>
// kernel: distillation_loss.1
= control target key start
LH: loop header
LB: loop body
LE: loop exit
PB: predicated region body
PF: predicated region fallthrough
CT: control target
= control target key end

     0   :  { %9 = vsyncpa [#allocation3], 0  ;;  %s527_s0 = inlined_call_operand.hbm [shape: f32[8,128], index: 0, kind: input, shape index: {}]   ;;  %s528_s1 = inlined_call_operand.hbm [shape: f32[256,128], index: 1, kind: input, shape index: {}]   ;;  %s529_s2 = inlined_call_operand.vmem [shape: f32[1,256], index: 2, kind: input, shape index: {}]   ;;  %s530_s3 = inlined_call_operand.hbm [shape: f32[8,256], index: 3, kind: input, shape index: {}]   ;;  %s531_s4 = inlined_call_operand.vmem [shape: f32[1,256], index: 4, kind: output, shape index: {}]  }
   0x1   :  { %10 = vsyncpa [#allocation5], 0  ;;  %s447_s15 = smov [#allocation4]   ;;  %s377_s19 = scalar_lea.hbm %s528_s1, 4096 }
   0x2   :  { %s26_s16 = sshll.u32 %s447_s15, 4  ;;  %p378_p0 = scmp.ne.s32.totalorder %s528_s1, %s377_s19  ;;  %s27_s16 = int_to_ptr.vmem [resolvable:$true] %s26_s16 }
   0x3   :  { %p381_p1 = scmp.lt.u32.totalorder %s377_s19, %s528_s1 }
   0x5   :  { %p383_p2 = pnand %p381_p1, %p378_p0 }
   0x7   :  { %386 = shalt.err (!%p383_p2)
}
   0x8   :  { %s387_s24 = scalar_lea.vmem %s27_s16, 4096  ;;  %p392_p4 = scmp.lt.s32.totalorder %s27_s16, %s27_s16 }
   0x9   :  { %p388_p3 = scmp.ne.s32.totalorder %s27_s16, %s387_s24  ;;  %p393_p5 = scmp.lt.s32.totalorder %s387_s24, %s387_s24 }
   0xb   :  { %p394_p6 = por %p393_p5, %p392_p4 }
   0xd   :  { %p395_p7 = pnand %p394_p6, %p388_p3 }
   0xf   :  { %398 = shalt.err (!%p395_p7)
}
  0x10   :  { %s448_s25 = smov 128   ;;  %s449_s26 = smov 8  }
  0x11   :  { %32 = dma.hbm_to_vmem [thread:$0]  %s528_s1, 4096, %s27_s16, [#allocation5], %s448_s25, %s448_s25, %s449_s26  }
  0x12   :  { %s450_s29 = smov [#allocation2]   ;;  %s451_s5 = smov [#allocation6]  }
  0x13   :  { %s17_s30 = sshll.u32 %s450_s29, 4  ;;  %s41_s6 = sshll.u32 %s451_s5, 4  ;;  %s18_s30 = int_to_ptr.vmem [resolvable:$true] %s17_s30  ;;  %s42_s6 = int_to_ptr.vmem [resolvable:$true] %s41_s6 }
  0x14   :  { %s399_s9 = scalar_lea.hbm %s527_s0, 128 }
  0x15   :  { %p400_p8 = scmp.ne.s32.totalorder %s527_s0, %s399_s9  ;;  %p403_p9 = scmp.lt.u32.totalorder %s399_s9, %s527_s0 }
  0x17   :  { %p405_p10 = pnand %p403_p9, %p400_p8 }
  0x19   :  { %408 = shalt.err (!%p405_p10)
}
  0x1a   :  { %s409_s1 = scalar_lea.vmem %s18_s30, 128  ;;  %p414_p12 = scmp.lt.s32.totalorder %s18_s30, %s18_s30 }
  0x1b   :  { %p410_p11 = scmp.ne.s32.totalorder %s18_s30, %s409_s1  ;;  %p415_p13 = scmp.lt.s32.totalorder %s409_s1, %s409_s1 }
  0x1d   :  { %p416_p0 = por %p415_p13, %p414_p12 }
  0x1f   :  { %p417_p1 = pnand %p416_p0, %p410_p11 }
  0x21   :  { %420 = shalt.err (!%p417_p1)
}
  0x22   :  { %20 = dma.hbm_to_vmem [thread:$0]  %s527_s0, 128, %s18_s30, [#allocation3]  }
  0x23   :  { %s421_s18 = scalar_lea.hbm %s530_s3, 256 }
  0x24   :  { %p422_p2 = scmp.ne.s32.totalorder %s530_s3, %s421_s18  ;;  %p425_p3 = scmp.lt.u32.totalorder %s421_s18, %s530_s3 }
  0x26   :  { %p427_p4 = pnand %p425_p3, %p422_p2 }
  0x28   :  { %430 = shalt.err (!%p427_p4)
}
  0x29   :  { %s431_s23 = scalar_lea.vmem %s42_s6, 256  ;;  %p436_p6 = scmp.lt.s32.totalorder %s42_s6, %s42_s6 }
  0x2a   :  { %p432_p5 = scmp.ne.s32.totalorder %s42_s6, %s431_s23  ;;  %p437_p7 = scmp.lt.s32.totalorder %s431_s23, %s431_s23 }
  0x2c   :  { %p438_p8 = por %p437_p7, %p436_p6 }
  0x2e   :  { %p439_p9 = pnand %p438_p8, %p432_p5 }
  0x30   :  { %442 = shalt.err (!%p439_p9)
}
  0x31   :  { %44 = dma.hbm_to_vmem [thread:$0]  %s530_s3, 256, %s42_s6, [#allocation5]  }
  0x32   :  { %443 = dma.done.wait [#allocation3], 128  }
  0x33   :  { %444 = vsyncadd [#allocation3], 4294967168 }
  0x34   :  { %445 = dma.done.wait [#allocation5], 4352  }
  0x35   :  { %446 = vsyncadd [#allocation5], 4294962944  ;;  %v71_v0 = vld [vmem:[#allocation4 + $0x80] sm:$0xff]  ;;  %v72_v1 = vld [vmem:[#allocation4 + $0x88] sm:$0xff]  ;;  %v89_v59 = vlaneseq }
  0x36   :  { %v55_v2 = vld [vmem:[#allocation4] sm:$0xff]  ;;  %v331_v3 = vpack.c.bf16 %v72_v1, %v71_v0  ;;  %v56_v4 = vld [vmem:[#allocation4 + $0x8] sm:$0xff]  ;;  %v73_v5 = vld [vmem:[#allocation4 + $0x90] sm:$0xff] }
  0x37   :  { %v74_v6 = vld [vmem:[#allocation4 + $0x98] sm:$0xff]  ;;  %v333_v7 = vpack.c.bf16 %v56_v4, %v55_v2  ;;  %v57_v9 = vld [vmem:[#allocation4 + $0x10] sm:$0xff]  ;;  %v75_v11 = vld [vmem:[#allocation4 + $0xa0] sm:$0xff]  ;;  %v515_v62 = vshrl.u32 %v89_v59, 7  ;;  %vm286_vm0 = vcmp.lt.s32.totalorder %v89_v59, 256 }
  0x38   :  { %v335_v8 = vpack.c.bf16 %v74_v6, %v73_v5  ;;  %332 = vmatprep.subr.bf16.mxu0 %v331_v3  ;;  %v58_v10 = vld [vmem:[#allocation4 + $0x18] sm:$0xff]  ;;  %v76_v12 = vld [vmem:[#allocation4 + $0xa8] sm:$0xff]  ;;  %v59_v16 = vld [vmem:[#allocation4 + $0x20] sm:$0xff] }
  0x39   :  { %334 = vmatpush3.bf16.xpose.msra.mxu0 %v333_v7  ;;  %v337_v13 = vpack.c.bf16 %v58_v10, %v57_v9  ;;  %v339_v14 = vpack.c.bf16 %v76_v12, %v75_v11  ;;  %v54_v15 = vld [vmem:[#allocation2] sm:$0xff]  ;;  %v60_v17 = vld [vmem:[#allocation4 + $0x28] sm:$0xff]  ;;  %v77_v18 = vld [vmem:[#allocation4 + $0xb0] sm:$0xff]  ;;  %v91_v1 = vsub.s32 0, %v515_v62  ;;  %v95_v3 = vsub.s32 1, %v515_v62 }
  0x3a   :  { %336 = vmatprep.subr.bf16.mxu0 %v335_v8  ;;  %329 = vmatprep.mubr.f32.mxu0 %v54_v15  ;;  %v78_v19 = vld [vmem:[#allocation4 + $0xb8] sm:$0xff]  ;;  %v341_v20 = vpack.c.bf16 %v60_v17, %v59_v16  ;;  %v61_v22 = vld [vmem:[#allocation4 + $0x30] sm:$0xff]  ;;  %v79_v24 = vld [vmem:[#allocation4 + $0xc0] sm:$0xff] }
  0x3b   :  { %v343_v21 = vpack.c.bf16 %v78_v19, %v77_v18  ;;  %v62_v23 = vld [vmem:[#allocation4 + $0x38] sm:$0xff]  ;;  %v80_v25 = vld [vmem:[#allocation4 + $0xc8] sm:$0xff]  ;;  %v63_v28 = vld [vmem:[#allocation4 + $0x40] sm:$0xff] }
  0x3c   :  { %v345_v26 = vpack.c.bf16 %v62_v23, %v61_v22  ;;  %v347_v27 = vpack.c.bf16 %v80_v25, %v79_v24  ;;  %v64_v29 = vld [vmem:[#allocation4 + $0x48] sm:$0xff]  ;;  %v81_v30 = vld [vmem:[#allocation4 + $0xd0] sm:$0xff]  ;;  %v82_v31 = vld [vmem:[#allocation4 + $0xd8] sm:$0xff] }
  0x3d   :  { %v349_v32 = vpack.c.bf16 %v64_v29, %v63_v28  ;;  %v351_v33 = vpack.c.bf16 %v82_v31, %v81_v30  ;;  %v65_v34 = vld [vmem:[#allocation4 + $0x50] sm:$0xff]  ;;  %v66_v35 = vld [vmem:[#allocation4 + $0x58] sm:$0xff]  ;;  %v83_v36 = vld [vmem:[#allocation4 + $0xe0] sm:$0xff] }
  0x3e   :  { %v84_v37 = vld [vmem:[#allocation4 + $0xe8] sm:$0xff]  ;;  %v353_v38 = vpack.c.bf16 %v66_v35, %v65_v34  ;;  %v67_v40 = vld [vmem:[#allocation4 + $0x60] sm:$0xff]  ;;  %v85_v42 = vld [vmem:[#allocation4 + $0xf0] sm:$0xff] }
  0x3f   :  { %v355_v39 = vpack.c.bf16 %v84_v37, %v83_v36  ;;  %v68_v41 = vld [vmem:[#allocation4 + $0x68] sm:$0xff]  ;;  %v86_v43 = vld [vmem:[#allocation4 + $0xf8] sm:$0xff]  ;;  %v69_v46 = vld [vmem:[#allocation4 + $0x70] sm:$0xff] }
  0x40   :  { %v357_v44 = vpack.c.bf16 %v68_v41, %v67_v40  ;;  %v359_v45 = vpack.c.bf16 %v86_v43, %v85_v42  ;;  %v70_v47 = vld [vmem:[#allocation4 + $0x78] sm:$0xff]  ;;  %v170_v49 = vld [vmem:[#allocation6] sm:$0xff]  ;;  %v171_v50 = vld [vmem:[#allocation6 + $0x8] sm:$0xff] }
  0x41   :  { %338 = vmatpush3.bf16.xpose.msra.mxu0 %v337_v13  ;;  %v361_v48 = vpack.c.bf16 %v70_v47, %v69_v46  ;;  %v204_v51 = vrot.slane %v170_v49, 4  ;;  %v210_v52 = vrot.slane %v171_v50, 4  ;;  %v87_v2 = vld [vmem:[%s529_s2] sm:$0x3] }
  0x42   :  { %340 = vmatprep.subr.bf16.mxu0 %v339_v14  ;;  %v92_v6 = vrot.slane %v87_v2, %v91_v1  ;;  %v96_v7 = vrot.slane %v87_v2, %v95_v3 }
  0x43   :  { %v205_v53 = vadd.f32 %v204_v51, %v170_v49  ;;  %v211_v54 = vadd.f32 %v210_v52, %v171_v50 }
  0x45   :  { %v206_v55 = vrot.slane %v205_v53, 2  ;;  %v212_v56 = vrot.slane %v211_v54, 2 }
  0x47   :  { %v207_v57 = vadd.f32 %v206_v55, %v205_v53  ;;  %v213_v58 = vadd.f32 %v212_v56, %v211_v54 }
  0x49   :  { %342 = vmatpush3.bf16.xpose.msra.mxu0 %v341_v20  ;;  %v208_v60 = vrot.slane %v207_v57, 1  ;;  %v214_v61 = vrot.slane %v213_v58, 1 }
  0x4a   :  { %344 = vmatprep.subr.bf16.mxu0 %v343_v21 }
  0x4b   :  { %v209_v63 = vadd.f32 %v208_v60, %v207_v57  ;;  %v215_v0 = vadd.f32 %v214_v61, %v213_v58 }
  0x4d   :  { %v216_v4 = vmul.f32 0.125, %v209_v63  ;;  %v217_v5 = vmul.f32 0.125, %v215_v0 }
  0x4f   :  { %v218_v8 = vsub.f32 %v170_v49, %v216_v4  ;;  %v219_v10 = vsub.f32 %v171_v50, %v217_v5 }
  0x51   :  { %346 = vmatpush3.bf16.xpose.msra.mxu0 %v345_v26  ;;  %v220_v12 = vmul.f32 %v218_v8, %v218_v8 }
  0x52   :  { %348 = vmatprep.subr.bf16.mxu0 %v347_v27 }
  0x53   :  { %v222_v19 = vrot.slane %v220_v12, 4 }
  0x55   :  { %v223_v25 = vadd.f32 %v222_v19, %v220_v12 }
  0x57   :  { %v224_v31 = vrot.slane %v223_v25, 2 }
  0x59   :  { %350 = vmatpush3.bf16.xpose.msra.mxu0 %v349_v32  ;;  %v225_v37 = vadd.f32 %v224_v31, %v223_v25 }
  0x5a   :  { %352 = vmatprep.subr.bf16.mxu0 %v351_v33 }
  0x61   :  { %354 = vmatpush3.bf16.xpose.msra.mxu0 %v353_v38 }
  0x62   :  { %356 = vmatprep.subr.bf16.mxu0 %v355_v39 }
  0x69   :  { %358 = vmatpush3.bf16.xpose.msra.mxu0 %v357_v44 }
  0x6a   :  { %360 = vmatprep.subr.bf16.mxu0 %v359_v45  ;;  %v226_v45 = vrot.slane %v225_v37, 1 }
  0x6c   :  { %v227_v54 = vadd.f32 %v226_v45, %v225_v37 }
  0x6e   :  { %v234_v0 = vmul.f32 0.125, %v227_v54 }
  0x70   :  { %369 = vrsqrt.f32 %v234_v0 }
  0x71   :  { %362 = vmatpush3.bf16.xpose.msra.mxu0 %v361_v48 }
  0x78   :  { %330 = vmatmul.mubr.f32.vlgmr.msra.gmra.mrb[0].mxu0 %v54_v15  ;;  %v221_v15 = vmul.f32 %v219_v10, %v219_v10 }
  0x7a   :  { %v228_v21 = vrot.slane %v221_v15, 4 }
  0x7c   :  { %v229_v27 = vadd.f32 %v228_v21, %v221_v15  ;;  %v452_v21 = vmov 1966171168  }
  0x7e   :  { %v230_v33 = vrot.slane %v229_v27, 2 }
  0x80   :  { %v231_v39 = vadd.f32 %v230_v33, %v229_v27 }
  0x82   :  { %v232_v48 = vrot.slane %v231_v39, 1 }
  0x84   :  { %v233_v57 = vadd.f32 %v232_v48, %v231_v39 }
  0x86   :  { %v235_v3 = vmul.f32 0.125, %v233_v57 }
  0x88   :  { %371 = vrsqrt.f32 %v235_v3 }
 0x14b   :  { %v165_v9 = vpop.f32.mrb[0].mxu0 }
 0x14c   :  { %v166_v11 = vadd.f32 %v165_v9, %v92_v6  ;;  %v167_v13 = vpop.f32.mrb[1].mxu0 }
 0x14d   :  { %v168_v14 = vadd.f32 %v167_v13, %v96_v7 }
 0x14e   :  { %v172_v16 = vrot.slane %v166_v11, 4 }
 0x14f   :  { %v178_v17 = vrot.slane %v168_v14, 4 }
 0x150   :  { %v173_v18 = vadd.f32 %v172_v16, %v166_v11 }
 0x151   :  { %v179_v20 = vadd.f32 %v178_v17, %v168_v14 }
 0x152   :  { %v174_v22 = vrot.slane %v173_v18, 2 }
 0x153   :  { %v180_v23 = vrot.slane %v179_v20, 2 }
 0x154   :  { %v175_v24 = vadd.f32 %v174_v22, %v173_v18  ;;  %v270_v22 = vunpack.c.l.s4 %v452_v21 }
 0x155   :  { %v181_v26 = vadd.f32 %v180_v23, %v179_v20 }
 0x156   :  { %v176_v28 = vrot.slane %v175_v24, 1  ;;  %v271_v27 = vunpack.c.0.s8 %v270_v22 }
 0x157   :  { %v182_v29 = vrot.slane %v181_v26, 1 }
 0x158   :  { %v177_v30 = vadd.f32 %v176_v28, %v175_v24 }
 0x159   :  { %v183_v32 = vadd.f32 %v182_v29, %v181_v26 }
 0x15a   :  { %v184_v34 = vmul.f32 0.125, %v177_v30 }
 0x15b   :  { %v185_v35 = vmul.f32 0.125, %v183_v32  ;;  %v274_v32 = vsub.s32 %v271_v27, %v515_v62 }
 0x15c   :  { %v186_v36 = vsub.f32 %v166_v11, %v184_v34 }
 0x15d   :  { %v187_v38 = vsub.f32 %v168_v14, %v185_v35  ;;  %v370_v14 = vpop.eup %369 }
 0x15e   :  { %v188_v40 = vmul.f32 %v186_v36, %v186_v36  ;;  %v236_v41 = vmul.f32 %v218_v8, %v186_v36  ;;  %v372_v15 = vpop.eup %371 }
 0x15f   :  { %v189_v42 = vmul.f32 %v187_v38, %v187_v38  ;;  %v237_v43 = vmul.f32 %v219_v10, %v187_v38 }
 0x160   :  { %v190_v44 = vrot.slane %v188_v40, 4  ;;  %v238_v46 = vrot.slane %v236_v41, 4 }
 0x161   :  { %v196_v47 = vrot.slane %v189_v42, 4  ;;  %v244_v49 = vrot.slane %v237_v43, 4 }
 0x162   :  { %v191_v50 = vadd.f32 %v190_v44, %v188_v40  ;;  %v239_v51 = vadd.f32 %v238_v46, %v236_v41 }
 0x163   :  { %v197_v52 = vadd.f32 %v196_v47, %v189_v42  ;;  %v245_v55 = vadd.f32 %v244_v49, %v237_v43 }
 0x164   :  { %v192_v53 = vrot.slane %v191_v50, 2  ;;  %v240_v60 = vrot.slane %v239_v51, 2 }
 0x165   :  { %v198_v56 = vrot.slane %v197_v52, 2  ;;  %v246_v1 = vrot.slane %v245_v55, 2 }
 0x166   :  { %v193_v58 = vadd.f32 %v192_v53, %v191_v50  ;;  %v241_v5 = vadd.f32 %v240_v60, %v239_v51 }
 0x167   :  { %v199_v61 = vadd.f32 %v198_v56, %v197_v52  ;;  %v247_v8 = vadd.f32 %v246_v1, %v245_v55 }
 0x168   :  { %v194_v63 = vrot.slane %v193_v58, 1  ;;  %v242_v10 = vrot.slane %v241_v5, 1 }
 0x169   :  { %v200_v2 = vrot.slane %v199_v61, 1  ;;  %v248_v11 = vrot.slane %v247_v8, 1 }
 0x16a   :  { %v195_v4 = vadd.f32 %v194_v63, %v193_v58  ;;  %v243_v12 = vadd.f32 %v242_v10, %v241_v5 }
 0x16b   :  { %v201_v6 = vadd.f32 %v200_v2, %v199_v61  ;;  %v249_v13 = vadd.f32 %v248_v11, %v247_v8 }
 0x16c   :  { %v202_v7 = vmul.f32 0.125, %v195_v4  ;;  %v250_v16 = vmul.f32 0.125, %v243_v12 }
 0x16d   :  { %v203_v9 = vmul.f32 0.125, %v201_v6  ;;  %v251_v18 = vmul.f32 0.125, %v249_v13 }
 0x16e   :  { %373 = vrsqrt.f32 %v202_v7 }
 0x16f   :  { %375 = vrsqrt.f32 %v203_v9 }
 0x178   :  { %v374_v17 = vpop.eup %373 }
 0x179   :  { %v376_v19 = vpop.eup %375  ;;  %v254_v20 = vmul.f32 %v374_v17, %v250_v16 }
 0x17a   :  { %v255_v23 = vmul.f32 %v376_v19, %v251_v18 }
 0x17b   :  { %v258_v24 = vmul.f32 %v370_v14, %v254_v20 }
 0x17c   :  { %v259_v25 = vmul.f32 %v372_v15, %v255_v23 }
 0x17d   :  { %v295_v26 = vadd.f32 -1.0, %v258_v24 }
 0x17e   :  { %v296_v28 = vadd.f32 -1.0, %v259_v25 }
 0x17f   :  { %v262_v29 = vmul.f32 %v295_v26, %v295_v26 }
 0x180   :  { %v263_v30 = vmul.f32 %v296_v28, %v296_v28 }
 0x181   :  { %v264_v31 = vmul.f32 %v262_v29, %v262_v29 }
 0x182   :  { %v265_v33 = vmul.f32 %v263_v30, %v263_v30 }
 0x184   :  { %v268_v34 = vcombine.low %v264_v31, %v265_v33 }
 0x186   :  { %v275_v35 = vrot.slane %v268_v34, %v274_v32 }
 0x188   :  { %v282_v36 = vrot.slane %v275_v35, %v274_v32 }
 0x18a   :  { %288 = vst.msk [vmem:[%s531_s4] sm:$0x3] %vm286_vm0, %v282_v36 }
 0x18b   :  { %293 = vsyncpa [#allocation3], 1 }
 0x18c   :  { %294 = vsyncpa [#allocation5], 1 }

</bundles_post_ra>
